<compile_context>
chip_gen: v7x
topology: tpu7x:2x2x1
jax: 0.10.0
libtpu: 0.0.40
codegen_flags: <defaults>
</compile_context>

<pallas_src>
import numpy as np

import jax
import jax.numpy as jnp
from jax.experimental import pallas as pl
from jax.experimental.pallas import tpu as pltpu


def _cdiv(a, b):
    return -(-a // b)


def _vmem_capacity_bytes():
    """Per-core VMEM capacity with a v7x-safe fallback."""
    try:
        info = pltpu.get_tpu_info()
        cap = int(getattr(info, "vmem_capacity_bytes", 0) or 0)
        if cap > 0:
            return cap
    except Exception:
        pass
    return 64 * 1024 * 1024  # conservative: v7x has 64 MiB per TensorCore


def _make_partial_kernel(edge_recons, has_mask, w_content, w_gx, w_gy):
    """Build the per-block partial-loss kernel (all arguments are static)."""

    def body(o_ref, i_ref, m_ref, part_ref):
        d = o_ref[...].astype(jnp.float32) - i_ref[...].astype(jnp.float32)

        if m_ref is not None:
            # m_ref is either (pc, 1, 1) plane-validity or (1, TH, 1)
            # row-validity; where() broadcasts it along the sublane/lane dims
            # and squashes any garbage read from a partial tail block.
            d = jnp.where(m_ref[...] > 0.0, d, 0.0)

        s = w_content * jnp.sum(d * d)
        if edge_recons:
            gx = d[:, 1:, :] - d[:, :-1, :]      # diff along H (sublanes)
            gy = d[:, :, 1:] - d[:, :, :-1]      # diff along W (lanes)
            s = s + w_gx * jnp.sum(gx * gx) + w_gy * jnp.sum(gy * gy)

        # One lane-dense vreg store per block; the JAX side reads lane 0.
        part_ref[...] = jnp.full((1, 1, 1, 128), s, dtype=jnp.float32)

    if has_mask:
        def kernel(o_ref, i_ref, m_ref, part_ref):
            body(o_ref, i_ref, m_ref, part_ref)
    else:
        def kernel(o_ref, i_ref, part_ref):
            body(o_ref, i_ref, None, part_ref)
    return kernel


def recons_loss_x(out, input_i, edge_recons=True, block_budget_bytes=None):
    """Forward pass of ReconsLossX (MSE + optional gradient-MSE terms)."""
    assert out.shape == input_i.shape, "out / input_i shape mismatch"
    N, C, H, W = out.shape
    nc = N * C
    o3 = out.reshape(nc, H, W)
    i3 = input_i.reshape(nc, H, W)
    itemsize = jnp.dtype(out.dtype).itemsize

    vmem_cap = _vmem_capacity_bytes()
    if block_budget_bytes is None:
        # Real footprint is 2 inputs x 2 pipeline buffers x block  ==  cap/2.
        block_budget_bytes = min(12 << 20, max(1 << 20, vmem_cap // 8))
    vmem_limit = int(vmem_cap * 3 // 4)

    plane_bytes = H * W * itemsize
    if plane_bytes <= block_budget_bytes:
        # Case A: whole (H, W) planes per block; tile over the N*C plane axis.
        TH = H
        pc = max(1, min(nc, block_budget_bytes // plane_bytes))
        npb = _cdiv(nc, pc)
        if npb == 1 and nc >= 2:
            # Ensure >= 2 blocks so the parallel grid shards across both v7x TCs.
            pc = _cdiv(nc, 2)
            npb = _cdiv(nc, pc)
        nhb = 1
    else:
        # Case B: one plane per block, tiled along H in TH-row strips.
        pc = 1
        TH = max(8, (block_budget_bytes // (W * itemsize)) // 8 * 8)
        if TH >= H:
            TH = H
        nhb = _cdiv(H, TH)
        npb = nc

    plane_tail = (nc % pc) != 0   # ragged tail block along planes (case A only)
    row_tail = (H % TH) != 0      # ragged tail block along rows   (case B only)
    has_mask = plane_tail or row_tail  # mutually exclusive by construction

    w_content = 1.0 / float(nc * H * W)
    w_gx = 1.0 / float(nc * (H - 1) * W) if edge_recons else 0.0
    w_gy = 1.0 / float(nc * H * (W - 1)) if edge_recons else 0.0

    kernel = _make_partial_kernel(edge_recons, has_mask, w_content, w_gx, w_gy)

    in_specs = [
        pl.BlockSpec((pc, TH, W), lambda i, j: (i, j, 0)),
        pl.BlockSpec((pc, TH, W), lambda i, j: (i, j, 0)),
    ]
    operands = [o3, i3]
    if plane_tail:
        pmask = (jnp.arange(npb * pc) < nc).astype(jnp.float32)
        operands.append(pmask.reshape(npb * pc, 1, 1))
        in_specs.append(pl.BlockSpec((pc, 1, 1), lambda i, j: (i, 0, 0)))
    elif row_tail:
        rmask = (jnp.arange(nhb * TH) < H).astype(jnp.float32)
        operands.append(rmask.reshape(1, nhb * TH, 1))
        in_specs.append(pl.BlockSpec((1, TH, 1), lambda i, j: (0, j, 0)))

    parts = pl.pallas_call(
        kernel,
        grid=(npb, nhb),
        in_specs=in_specs,
        out_specs=pl.BlockSpec((1, 1, 1, 128), lambda i, j: (i, j, 0, 0)),
        out_shape=jax.ShapeDtypeStruct((npb, nhb, 1, 128), jnp.float32),
        compiler_params=pltpu.CompilerParams(
            dimension_semantics=("parallel", "parallel"),
            vmem_limit_bytes=vmem_limit,
        ),
    )(*operands)

    loss = jnp.sum(parts[:, :, 0, 0])

    if edge_recons:
        if nhb > 1:
            # H-block seams: add the one row-diff pair that straddles each
            # block boundary (thin O(nc * W) strips, negligible vs the kernel).
            r = np.arange(1, nhb) * TH  # every seam row is < H by construction
            d_hi = o3[:, r, :].astype(jnp.float32) - i3[:, r, :].astype(jnp.float32)
            d_lo = (o3[:, r - 1, :].astype(jnp.float32)
                    - i3[:, r - 1, :].astype(jnp.float32))
            loss = loss + w_gx * jnp.sum((d_hi - d_lo) ** 2)
        if row_tail:
            # Ragged last H block: the kernel paired the last real row with a
            # zeroed pad row -> subtract the spurious d[H-1]^2 contribution.
            d_last = (o3[:, H - 1, :].astype(jnp.float32)
                      - i3[:, H - 1, :].astype(jnp.float32))
            loss = loss - w_gx * jnp.sum(d_last * d_last)

    return loss


def _reference(out, inp, edge_recons=True):
    """Pure-JAX mirror of the PyTorch module."""
    out = out.astype(jnp.float32)
    inp = inp.astype(jnp.float32)
    content = jnp.mean((out - inp) ** 2)
    if not edge_recons:
        return content
    gx_o = out[..., 1:, :] - out[..., :-1, :]
    gy_o = out[..., 1:] - out[..., :-1]
    gx_i = inp[..., 1:, :] - inp[..., :-1, :]
    gy_i = inp[..., 1:] - inp[..., :-1]
    gdx = jnp.mean((gx_o - gx_i) ** 2)
    gdy = jnp.mean((gy_o - gy_i) ** 2)
    return content + (gdx + gdy) * 1.0


if __name__ == "__main__":
    key = jax.random.PRNGKey(0)
    k1, k2, k3, k4, k5, k6 = jax.random.split(key, 6)

    # Main example: N=2, C=4, H=16, W=16 (no masks, 2 plane blocks).
    shape = (2, 4, 16, 16)
    out_img = jax.random.uniform(k1, shape, dtype=jnp.float32)
    in_img = jax.random.uniform(k2, shape, dtype=jnp.float32)

    loss = jax.block_until_ready(recons_loss_x(out_img, in_img))
    ref = _reference(out_img, in_img)
    assert jnp.allclose(loss, ref, rtol=1e-5, atol=1e-6), (float(loss), float(ref))

    # edge_recons=False path (content-only kernel variant).
    loss_c = jax.block_until_ready(recons_loss_x(out_img, in_img, edge_recons=False))
    ref_c = _reference(out_img, in_img, edge_recons=False)
    assert jnp.allclose(loss_c, ref_c, rtol=1e-5, atol=1e-6), (float(loss_c), float(ref_c))

    # Non-divisible plane count -> ragged tail plane block + plane mask.
    shape2 = (1, 3, 16, 16)
    o_b = jax.random.uniform(k3, shape2, dtype=jnp.float32)
    i_b = jax.random.uniform(k4, shape2, dtype=jnp.float32)
    loss2 = jax.block_until_ready(recons_loss_x(o_b, i_b))
    ref2 = _reference(o_b, i_b)
    assert jnp.allclose(loss2, ref2, rtol=1e-5, atol=1e-6), (float(loss2), float(ref2))

    # "Large plane" path at small shapes: tiny forced budget -> H tiling with
    # a ragged tail row block, row mask, seam + spurious-tail corrections.
    shape3 = (1, 2, 40, 16)
    o_c = jax.random.uniform(k5, shape3, dtype=jnp.float32)
    i_c = jax.random.uniform(k6, shape3, dtype=jnp.float32)
    loss3 = jax.block_until_ready(recons_loss_x(o_c, i_c, block_budget_bytes=2048))
    ref3 = _reference(o_c, i_c)
    assert jnp.allclose(loss3, ref3, rtol=1e-5, atol=1e-6), (float(loss3), float(ref3))

    print("KERNEL_OK")
</pallas_src>

<mosaic_0001>
module attributes {stable_mosaic.version = 11 : i64} {
  func.func @kernel(%arg0: i32, %arg1: i32, %arg2: memref<4x16x16xf32, #tpu.memory_space<vmem>>, %arg3: memref<4x16x16xf32, #tpu.memory_space<vmem>>, %arg4: memref<1x1x1x128xf32, #tpu.memory_space<vmem>>) attributes {dimension_semantics = [#tpu.dimension_semantics<parallel>, #tpu.dimension_semantics<parallel>], iteration_bounds = array<i64: 2, 1>, scalar_prefetch = 0 : i64, scratch_operands = 0 : i64, tpu.core_type = #tpu.core_type<tc>, window_params = [{transform_indices = @transform_0, window_bounds = array<i64: 4, 16, 16>}, {transform_indices = @transform_1, window_bounds = array<i64: 4, 16, 16>}, {transform_indices = @transform_2, window_bounds = array<i64: 1, 1, 1, 128>}]} {
    %c0 = arith.constant 0 : index
    %c0_0 = arith.constant 0 : index
    %c0_1 = arith.constant 0 : index
    %0 = vector.load %arg2[%c0, %c0_0, %c0_1] : memref<4x16x16xf32, #tpu.memory_space<vmem>>, vector<4x16x16xf32>
    %c0_2 = arith.constant 0 : index
    %c0_3 = arith.constant 0 : index
    %c0_4 = arith.constant 0 : index
    %1 = vector.load %arg3[%c0_2, %c0_3, %c0_4] : memref<4x16x16xf32, #tpu.memory_space<vmem>>, vector<4x16x16xf32>
    %2 = arith.subf %0, %1 : vector<4x16x16xf32>
    %3 = arith.mulf %2, %2 : vector<4x16x16xf32>
    %4 = vector.shape_cast %3 : vector<4x16x16xf32> to vector<1x4x16x16xf32>
    %cst = arith.constant dense<0.000000e+00> : vector<1xf32>
    %5 = vector.multi_reduction <add>, %4, %cst [1, 2, 3] : vector<1x4x16x16xf32> to vector<1xf32>
    %6 = vector.shape_cast %5 : vector<1xf32> to vector<1x1x1x1xf32>
    %7 = vector.extract %6[0, 0, 0, 0] : f32 from vector<1x1x1x1xf32>
    %cst_5 = arith.constant 4.8828125E-4 : f32
    %8 = arith.mulf %cst_5, %7 : f32
    %9 = vector.extract_strided_slice %2 {offsets = [0, 1, 0], sizes = [4, 15, 16], strides = [1, 1, 1]} : vector<4x16x16xf32> to vector<4x15x16xf32>
    %10 = vector.extract_strided_slice %2 {offsets = [0, 0, 0], sizes = [4, 15, 16], strides = [1, 1, 1]} : vector<4x16x16xf32> to vector<4x15x16xf32>
    %11 = arith.subf %9, %10 : vector<4x15x16xf32>
    %12 = vector.extract_strided_slice %2 {offsets = [0, 0, 1], sizes = [4, 16, 15], strides = [1, 1, 1]} : vector<4x16x16xf32> to vector<4x16x15xf32>
    %13 = vector.extract_strided_slice %2 {offsets = [0, 0, 0], sizes = [4, 16, 15], strides = [1, 1, 1]} : vector<4x16x16xf32> to vector<4x16x15xf32>
    %14 = arith.subf %12, %13 : vector<4x16x15xf32>
    %15 = arith.mulf %11, %11 : vector<4x15x16xf32>
    %16 = vector.shape_cast %15 : vector<4x15x16xf32> to vector<1x4x15x16xf32>
    %cst_6 = arith.constant dense<0.000000e+00> : vector<1xf32>
    %17 = vector.multi_reduction <add>, %16, %cst_6 [1, 2, 3] : vector<1x4x15x16xf32> to vector<1xf32>
    %18 = vector.shape_cast %17 : vector<1xf32> to vector<1x1x1x1xf32>
    %19 = vector.extract %18[0, 0, 0, 0] : f32 from vector<1x1x1x1xf32>
    %cst_7 = arith.constant 5.2083336E-4 : f32
    %20 = arith.mulf %cst_7, %19 : f32
    %21 = arith.addf %8, %20 : f32
    %22 = arith.mulf %14, %14 : vector<4x16x15xf32>
    %23 = vector.shape_cast %22 : vector<4x16x15xf32> to vector<1x4x16x15xf32>
    %cst_8 = arith.constant dense<0.000000e+00> : vector<1xf32>
    %24 = vector.multi_reduction <add>, %23, %cst_8 [1, 2, 3] : vector<1x4x16x15xf32> to vector<1xf32>
    %25 = vector.shape_cast %24 : vector<1xf32> to vector<1x1x1x1xf32>
    %26 = vector.extract %25[0, 0, 0, 0] : f32 from vector<1x1x1x1xf32>
    %cst_9 = arith.constant 5.2083336E-4 : f32
    %27 = arith.mulf %cst_9, %26 : f32
    %28 = arith.addf %21, %27 : f32
    %29 = vector.broadcast %28 : f32 to vector<1x1x1x128xf32>
    %c0_10 = arith.constant 0 : index
    %c0_11 = arith.constant 0 : index
    %c0_12 = arith.constant 0 : index
    %c0_13 = arith.constant 0 : index
    %30 = vector.load %arg4[%c0_10, %c0_11, %c0_12, %c0_13] : memref<1x1x1x128xf32, #tpu.memory_space<vmem>>, vector<1x1x1x128xf32>
    tpu.vector_store %arg4[%c0_10, %c0_11, %c0_12, %c0_13], %29 {strides = array<i32>} : memref<1x1x1x128xf32, #tpu.memory_space<vmem>>, vector<1x1x1x128xf32>,
    return
  }
  func.func @transform_0(%arg0: i32, %arg1: i32) -> (i32, i32, i32) {
    %c0_i32 = arith.constant 0 : i32
    %c0_i32_0 = arith.constant 0 : i32
    return %arg0, %arg1, %c0_i32 : i32, i32, i32
  }
  func.func @transform_1(%arg0: i32, %arg1: i32) -> (i32, i32, i32) {
    %c0_i32 = arith.constant 0 : i32
    %c0_i32_0 = arith.constant 0 : i32
    return %arg0, %arg1, %c0_i32 : i32, i32, i32
  }
  func.func @transform_2(%arg0: i32, %arg1: i32) -> (i32, i32, i32, i32) {
    %c0_i32 = arith.constant 0 : i32
    %c0_i32_0 = arith.constant 0 : i32
    %c0_i32_1 = arith.constant 0 : i32
    return %arg0, %arg1, %c0_i32, %c0_i32_0 : i32, i32, i32, i32
  }
}

</mosaic_0001>

<bundles_post_ra>
// kernel: tpu_custom_call.1
= control target key start
LH: loop header
LB: loop body
LE: loop exit
PB: predicated region body
PF: predicated region fallthrough
CT: control target
= control target key end

     0   :  { %7 = vsyncpa [#allocation3], 0  ;;  %s1209_s0 = inlined_call_operand.hbm [shape: f32[8,16,16], index: 0, kind: input, shape index: {}]   ;;  %s1210_s1 = inlined_call_operand.hbm [shape: f32[8,16,16], index: 1, kind: input, shape index: {}]   ;;  %s1211_s2 = inlined_call_operand.hbm [shape: f32[2,1,1,128], index: 2, kind: output, shape index: {}]  }
   0x1   :  { %9 = vsyncpa [#allocation3 + $0x1], 0 }
   0x2   :  { %10 = vsyncpa [#allocation6], 0 }
   0x3   :  { %12 = vsyncpa [#allocation6 + $0x1], 0 }
   0x4   :  { %13 = vsyncpa [#allocation4], 0 }
   0x5   :  { %15 = vsyncpa [#allocation4 + $0x1], 0  ;;  %s876_s9 = smov 0   ;;  %s878_s10 = smov 0  }
   0x6   :  { %s880_s11 = smov 0   ;;  %s882_s12 = smov 0  }
   0x7   :  { %s884_s13 = smov 0   ;;  %s886_s14 = smov 0  }
   0x8 LB: > { %s607_s15 = sadd.s32 4294967295, %s852_s14   ;;  %s608_s16 = sadd.s32 4294967294, %s852_s14   ;;  %s852_s14 = sphi %s886_s14, %s21_s14   ;;  %s848_s13 = sphi %s884_s13, %s1229_s13   ;;  %s844_s12 = sphi %s882_s12, %s1228_s12   ;;  %s840_s11 = sphi %s880_s11, %s1227_s11   ;;  %s836_s10 = sphi %s878_s10, %s1226_s10   ;;  %s832_s9 = sphi %s876_s9, %s1225_s9  }
   0x9   : > { %s33_s17 = sadd.s32 1, %s848_s13  ;;  %s42_s18 = sadd.s32 1, %s840_s11 }
   0xa   : > { %p35_p0 = scmp.ge.s32.totalorder %s33_s17, 2  ;;  %p49_p1 = scmp.ne.s32.totalorder %s840_s11, %s836_s10 }
   0xb   : > { %p50_p2 = scmp.eq.s32.totalorder %s852_s14, 0  ;;  %p55_p3 = scmp.ne.s32.totalorder %s836_s10, %s832_s9 }
   0xc   : > { %s1231_s17 = smov (%p35_p0, %s33_s17), 0  ;;  %p56_p5 = scmp.eq.s32.totalorder %s607_s15, 0 }
   0xd   : > { %p917_p4 = por %p50_p2, %p49_p1  ;;  %s37_s20 = ssub.s32 %s848_s13, %s1231_s17 }
   0xe   : > { %p109_p6 = scmp.eq.s32.totalorder %s607_s15, 1  ;;  %p40_p7 = scmp.eq.s32.totalorder %s37_s20, 0 }
   0xf   : > { %p923_p8 = por %p56_p5, %p55_p3  ;;  %p115_p10 = scmp.eq.s32.totalorder %s608_s16, 1 }
  0x10   : > { %p927_p9 = por %p109_p6, %p49_p1  ;;  %p652_p13 = scmp.lt.s32.totalorder %s852_s14, 2 }
  0x11   : > { %s1215_s21 = scalar_select %p923_p8, 1, 0 }
  0x12   : > { %s1216_s22 = scalar_select %p927_p9, 1, 0 }
  0x13   : > { %s932_s23 = scalar_select %p40_p7, %s840_s11, %s42_s18  }
  0x14   : > { %p934_p11 = por %p115_p10, %p55_p3  ;;  %s941_s25 = sand.u32 1, %s840_s11  }
  0x15   : > { %s611_s26 = sshll.u32 %s941_s25, 6  ;;  %s626_s27 = sshll.u32 %s848_s13, 10 }
  0x16   : > { %s1217_s24 = scalar_select %p934_p11, 1, 0 }
  0x17   : > { %s950_s30 = scalar_lea.hbm %s1209_s0, %s626_s27  ;;  %s139_s3 = scalar_lea.vmem [#allocation2], %s611_s26 }
  0x18   : > { %s149_s4 = sshll.u32 %s139_s3, 4  ;;  %p958_p0 = pnand %p652_p13, %p917_p4  ;;  %s954_s4 = int_to_ptr.vmem [resolvable:$true] %s149_s4 }
  0x19   : > { %s136_s6 = scalar_lea.sflag [#allocation3], %s941_s25  ;;  %s706_s7 = scalar_lea.hbm %s950_s30, 1024 }
  0x1a   : > { %p707_p2 = scmp.ne.s32.totalorder %s950_s30, %s706_s7  ;;  %p708_p3 = pneg %p958_p0 }
  0x1b   : > { %s711_s16 = scalar_lea.hbm %s1209_s0, 2048  ;;  %p712_p4 = scmp.lt.u32.totalorder %s950_s30, %s1209_s0 }
  0x1c   : > { %p709_p5 = pnand %p708_p3, %p707_p2  ;;  %p713_p7 = scmp.lt.u32.totalorder %s711_s16, %s706_s7 }
  0x1d   : > { %p715_p13 = scmp.lt.u32.totalorder %s706_s7, %s950_s30 }
  0x1e   : > { %p710_p6 = pneg %p709_p5  ;;  %p714_p10 = por %p713_p7, %p712_p4 }
  0x20   : > { %p716_p12 = por %p715_p13, %p714_p10 }
  0x22   : > { %p717_p1 = pnand %p716_p12, %p710_p6 }
  0x24   : > { %720 = shalt.err (!%p717_p1)
}
  0x25   : > { %s721_s20 = scalar_lea.vmem %s954_s4, 1024  ;;  %s854_s28 = smov [#allocation2]  }
  0x26   : > { %p722_p2 = scmp.ne.s32.totalorder %s954_s4, %s721_s20  ;;  %s726_s29 = sshll.u32 %s854_s28, 4  ;;  %s727_s29 = int_to_ptr.vmem [resolvable:$false] %s726_s29 }
  0x27   : > { %s728_s3 = scalar_lea.vmem %s727_s29, 2048  ;;  %p729_p9 = scmp.lt.s32.totalorder %s954_s4, %s727_s29 }
  0x28   : > { %p724_p5 = pnand %p722_p2, %p708_p3  ;;  %p730_p4 = scmp.lt.s32.totalorder %s728_s3, %s721_s20 }
  0x2a   : > { %p725_p11 = pneg %p724_p5  ;;  %p731_p7 = por %p730_p4, %p729_p9 }
  0x2c   : > { %p732_p10 = pnand %p731_p7, %p725_p11 }
  0x2e   : > { %735 = shalt.err (!%p732_p10)
}
  0x2f   : > { %s855_s7 = smov 128   ;;  %s856_s8 = smov 8  }
  0x30   : > { %644 = dma.hbm_to_vmem [thread:$0]  (!%p958_p0), %s950_s30, 1024, %s954_s4, %s136_s6, %s855_s7, %s855_s7, %s856_s8  }
  0x31   : > { %p181_p9 = scmp.lt.s32.totalorder %s852_s14, 3  ;;  %s1000_s18 = scalar_lea.hbm %s1210_s1, %s626_s27 }
  0x32   : > { %p1219_p11 = scmp.ge.s32.totalorder %s852_s14, 1  ;;  %s163_s20 = scalar_lea.vmem [#allocation5], %s611_s26 }
  0x33   : > { %s173_s28 = sshll.u32 %s163_s20, 4  ;;  %s160_s30 = scalar_lea.sflag [#allocation6], %s941_s25  ;;  %s1010_s28 = int_to_ptr.vmem [resolvable:$true] %s173_s28 }
  0x34   : > { %p1004_p12 = pnand %p1219_p11, %p181_p9  ;;  %s736_s4 = scalar_lea.hbm %s1000_s18, 1024 }
  0x35   : > { %p737_p1 = scmp.ne.s32.totalorder %s1000_s18, %s736_s4  ;;  %s741_s29 = scalar_lea.hbm %s1210_s1, 2048 }
  0x36   : > { %p742_p2 = scmp.lt.u32.totalorder %s1000_s18, %s1210_s1  ;;  %p743_p5 = scmp.lt.u32.totalorder %s741_s29, %s736_s4 }
  0x37   : > { %p739_p6 = pnand %p737_p1, %p708_p3  ;;  %p745_p7 = scmp.lt.u32.totalorder %s736_s4, %s1000_s18 }
  0x38   : > { %p744_p4 = por %p743_p5, %p742_p2 }
  0x39   : > { %p740_p13 = pneg %p739_p6 }
  0x3a   : > { %p746_p10 = por %p745_p7, %p744_p4 }
  0x3c   : > { %p747_p9 = pnand %p746_p10, %p740_p13 }
  0x3e   : > { %750 = shalt.err (!%p747_p9)
}
  0x3f   : > { %s751_s26 = scalar_lea.vmem %s1010_s28, 1024  ;;  %s857_s16 = smov [#allocation5]  }
  0x40   : > { %p752_p11 = scmp.ne.s32.totalorder %s1010_s28, %s751_s26  ;;  %s756_s20 = sshll.u32 %s857_s16, 4  ;;  %s757_s20 = int_to_ptr.vmem [resolvable:$false] %s756_s20 }
  0x41   : > { %s758_s27 = scalar_lea.vmem %s757_s20, 2048  ;;  %p759_p8 = scmp.lt.s32.totalorder %s1010_s28, %s757_s20 }
  0x42   : > { %p754_p1 = pnand %p752_p11, %p708_p3  ;;  %p760_p2 = scmp.lt.s32.totalorder %s758_s27, %s751_s26 }
  0x44   : > { %p755_p6 = pneg %p754_p1  ;;  %p761_p5 = por %p760_p2, %p759_p8 }
  0x46   : > { %p762_p4 = pnand %p761_p5, %p755_p6 }
  0x48   : > { %765 = shalt.err (!%p762_p4)
}
  0x49   : > { %647 = dma.hbm_to_vmem [thread:$0]  (!%p958_p0), %s1000_s18, 1024, %s1010_s28, %s160_s30, %s855_s7, %s855_s7, %s856_s8  }
  0x4a   : > { %185 = sbr.rel (%p1004_p12) target bundleno = 564 (0x234), region = 28  ;;  %s1044_s4 = sand.u32 (!%p1004_p12), 1, %s836_s10  }
  0x4b   : > { %s620_s6 = sshll.u32 (!%p1004_p12), %s1044_s4, 6  ;;  %s188_s29 = scalar_lea.sflag (!%p1004_p12), [#allocation3], %s1044_s4 }
  0x4c   : > { %s1048_s5 = scalar_lea.vmem (!%p1004_p12), [#allocation2], %s620_s6  ;;  %p1221_p8 = scmp.ne.s32.totalorder (!%p1004_p12), %s1215_s21, 0 }
  0x51   : > { %819 = dma.done.wait (%p1221_p8), %s188_s29, 1024  }
  0x52   : > { %821 = vsyncadd (%p1221_p8), %s188_s29, 4294966272  ;;  %s197_s25 = scalar_lea.sflag [#allocation6], %s1044_s4  ;;  %s200_s7 = scalar_lea.vmem [#allocation5], %s620_s6 }
  0x53   : > { %823 = dma.done.wait (%p1221_p8), %s197_s25, 1024  }
  0x54   : > { %825 = vsyncadd (%p1221_p8), %s197_s25, 4294966272  ;;  %v229_v0 = vld [vmem:[%s1048_s5] sm:$0xff]  ;;  %v231_v2 = vld [vmem:[%s1048_s5 + $0x10] sm:$0xff]  ;;  %s858_s21 = smov 1   ;;  %s859_s8 = smov 127   ;;  %vm295_vm0 = vcmask 1040384  }
  0x55   : > { %v237_v1 = vld [vmem:[%s200_s7] sm:$0xff]  ;;  %v239_v4 = vld [vmem:[%s200_s7 + $0x10] sm:$0xff]  ;;  %v230_v5 = vld [vmem:[%s1048_s5 + $0x8] sm:$0xff]  ;;  %vm261_vm1 = vcmask 130048   ;;  %vm372_vm2 = vcmask 1046528   ;;  %vm394_vm3 = vcmask 129024  }
  0x56   : > { %v245_v3 = vsub.f32 %v229_v0, %v237_v1  ;;  %v238_v6 = vld [vmem:[%s200_s7 + $0x8] sm:$0xff]  ;;  %v1062_v7 = vsub.f32 %v231_v2, %v239_v4  ;;  %v232_v8 = vld [vmem:[%s1048_s5 + $0x18] sm:$0xff]  ;;  %v233_v12 = vld [vmem:[%s1048_s5 + $0x20] sm:$0xff]  ;;  %vm460_vm4 = vcmask 121856   ;;  %s622_s3 = sshll.u32 %s844_s12, 4  ;;  %s224_s26 = scalar_lea.vmem [#allocation7], %s1044_s4 }
  0x57   : > { %v240_v9 = vld [vmem:[%s200_s7 + $0x18] sm:$0xff]  ;;  %v246_v10 = vsub.f32 %v230_v5, %v238_v6  ;;  %v241_v13 = vld [vmem:[%s200_s7 + $0x20] sm:$0xff]  ;;  %v234_v14 = vld [vmem:[%s1048_s5 + $0x28] sm:$0xff]  ;;  %s503_s16 = sshll.u32 %s224_s26, 4  ;;  %s1160_s25 = scalar_lea.hbm %s1211_s2, %s622_s3  ;;  %s1162_s16 = int_to_ptr.vmem [resolvable:$true] %s503_s16 }
  0x58   : > { %324 = vrot.lane.b32.xlu0 %v245_v3, %s858_s21  ;;  %328 = vrot.lane.b32.xlu1 %v1062_v7, %s858_s21  ;;  %v1066_v11 = vsub.f32 %v232_v8, %v240_v9  ;;  %v242_v15 = vld [vmem:[%s200_s7 + $0x28] sm:$0xff]  ;;  %v1070_v16 = vsub.f32 %v233_v12, %v241_v13  ;;  %v235_v18 = vld [vmem:[%s1048_s5 + $0x30] sm:$0xff]  ;;  %v296_v30 = vrot.slane %v245_v3, 7  ;;  %v299_v37 = vrot.slane %v1062_v7, 7  ;;  %s766_s12 = scalar_lea.vmem %s1162_s16, 16  ;;  %p1222_p3 = scmp.ne.s32.totalorder %s1216_s22, 0 }
  0x59   : > { %v1073_v17 = vsub.f32 %v234_v14, %v242_v15  ;;  %v243_v19 = vld [vmem:[%s200_s7 + $0x30] sm:$0xff]  ;;  %v236_v20 = vld [vmem:[%s1048_s5 + $0x38] sm:$0xff]  ;;  %v297_v31 = vrot.slane %v246_v10, 7  ;;  %v253_v51 = vmul.f32 %v245_v3, %v245_v3  ;;  %v254_v55 = vmul.f32 %v246_v10, %v246_v10  ;;  %p767_p0 = scmp.ne.s32.totalorder %s1162_s16, %s766_s12 }
  0x5a   : > { %v244_v21 = vld [vmem:[%s200_s7 + $0x38] sm:$0xff]  ;;  %v1078_v22 = vsub.f32 %v235_v18, %v243_v19  ;;  %v300_v38 = vrot.slane %v1066_v11, 7  ;;  %v316_v45 = vsub.f32 %v245_v3, %v296_v30  ;;  %v318_v50 = vsub.f32 %v1062_v7, %v299_v37  ;;  %s490_s7 = scalar_lea.sflag [#allocation4], %s1044_s4 }
  0x5b   : > { %v1081_v23 = vsub.f32 %v236_v20, %v244_v21  ;;  %v298_v40 = vsel %vm295_vm0, %v296_v30, %v297_v31  ;;  %v302_v60 = vrot.slane %v1070_v16, 7  ;;  %v303_v61 = vrot.slane %v1073_v17, 7  ;;  %p768_p12 = pnand %p767_p0, %p1222_p3 }
  0x5c   : > { %326 = vrot.lane.b32.xlu0 %v246_v10, %s858_s21  ;;  %330 = vrot.lane.b32.xlu1 %v1066_v11, %s858_s21  ;;  %v301_v47 = vsel %vm295_vm0, %v299_v37, %v300_v38  ;;  %v317_v48 = vsub.f32 %v246_v10, %v298_v40  ;;  %v356_v58 = vmul.f32 %v316_v45, %v316_v45  ;;  %v262_v1 = vsel %vm261_vm1, %v253_v51, 0.0 }
  0x5d   : > { %v319_v57 = vsub.f32 %v1066_v11, %v301_v47  ;;  %v255_v0 = vmul.f32 %v1062_v7, %v1062_v7  ;;  %v263_v2 = vsel %vm261_vm1, %v254_v55, 0.0  ;;  %v304_v4 = vsel %vm295_vm0, %v302_v60, %v303_v61  ;;  %p769_p13 = pneg %p768_p12 }
  0x5e   : > { %v357_v62 = vmul.f32 %v317_v48, %v317_v48  ;;  %v373_v6 = vrot.slane %v356_v58, 1  ;;  %v264_v9 = vadd.f32 %v263_v2, %v262_v1  ;;  %v321_v13 = vsub.f32 %v1073_v17, %v304_v4 }
  0x5f   : > { %v359_v5 = vmul.f32 %v319_v57, %v319_v57  ;;  %v265_v12 = vsel %vm261_vm1, %v255_v0, 0.0  ;;  %v305_v19 = vrot.slane %v1078_v22, 7  ;;  %v306_v20 = vrot.slane %v1081_v23, 7 }
  0x60   : > { %332 = vrot.lane.b32.xlu0 %v1070_v16, %s858_s21  ;;  %334 = vrot.lane.b32.xlu1 %v1073_v17, %s858_s21  ;;  %v374_v8 = vrot.slane %v357_v62, 1  ;;  %v266_v21 = vadd.f32 %v265_v12, %v264_v9  ;;  %v260_v48 = vmul.f32 %v1081_v23, %v1081_v23 }
  0x61   : > { %v377_v18 = vrot.slane %v359_v5, 1  ;;  %v307_v30 = vsel %vm295_vm0, %v305_v19, %v306_v20 }
  0x62   : > { %v375_v14 = vsel %vm372_vm2, %v373_v6, %v374_v8 }
  0x64   : > { %336 = vrot.lane.b32.xlu0 %v1078_v22, %s858_s21  ;;  %338 = vrot.lane.b32.xlu1 %v1081_v23, %s858_s21  ;;  %s860_s21 = smov [#allocation7]  }
  0xca   : > { %v325_v24 = vpop.permute.xlu0 %324  ;;  %v329_v26 = vpop.permute.xlu1 %328 }
  0xcb   : > { %v348_v25 = vsub.f32 %v245_v3, %v325_v24  ;;  %v350_v27 = vsub.f32 %v1062_v7, %v329_v26  ;;  %v358_v3 = vmul.f32 %v318_v50, %v318_v50  ;;  %v320_v7 = vsub.f32 %v1070_v16, %v302_v60 }
  0xcc   : > { %v257_v24 = vmul.f32 %v1070_v16, %v1070_v16  ;;  %v395_v26 = vsel %vm394_vm3, %v374_v8, 0.0 }
  0xcd   : > { %v420_v28 = vmul.f32 %v348_v25, %v348_v25  ;;  %v422_v32 = vmul.f32 %v350_v27, %v350_v27  ;;  %v376_v15 = vrot.slane %v358_v3, 1  ;;  %v393_v25 = vsel %vm261_vm1, %v375_v14, 0.0 }
  0xce   : > { %v327_v29 = vpop.permute.xlu0 %326  ;;  %v331_v34 = vpop.permute.xlu1 %330  ;;  %v360_v27 = vmul.f32 %v320_v7, %v320_v7 }
  0xcf   : > { %v349_v33 = vsub.f32 %v246_v10, %v327_v29  ;;  %436 = vrot.lane.b32.xlu0 %v420_v28, %s859_s8  ;;  %v351_v35 = vsub.f32 %v1066_v11, %v331_v34  ;;  %v256_v10 = vmul.f32 %v1066_v11, %v1066_v11  ;;  %v361_v28 = vmul.f32 %v321_v13, %v321_v13 }
  0xd0   : > { %v378_v29 = vsel %vm372_vm2, %v376_v15, %v377_v18  ;;  %v269_v34 = vsel %vm261_vm1, %v257_v24, 0.0  ;;  %v379_v37 = vrot.slane %v360_v27, 1 }
  0xd1   : > { %v421_v36 = vmul.f32 %v349_v33, %v349_v33  ;;  %v423_v41 = vmul.f32 %v351_v35, %v351_v35  ;;  %v267_v11 = vsel %vm261_vm1, %v256_v10, 0.0  ;;  %v258_v33 = vmul.f32 %v1073_v17, %v1073_v17 }
  0xd2   : > { %v333_v39 = vpop.permute.xlu0 %332  ;;  %v335_v43 = vpop.permute.xlu1 %334  ;;  %v268_v31 = vadd.f32 %v267_v11, %v266_v21  ;;  %v322_v35 = vsub.f32 %v1078_v22, %v305_v19  ;;  %v380_v38 = vrot.slane %v361_v28, 1 }
  0xd3   : > { %440 = vrot.lane.b32.xlu0 %v422_v32, %s859_s8  ;;  %438 = vrot.lane.b32.xlu1 %v421_v36, %s859_s8  ;;  %v352_v42 = vsub.f32 %v1070_v16, %v333_v39  ;;  %v353_v44 = vsub.f32 %v1073_v17, %v335_v43  ;;  %v396_v32 = vadd.f32 %v395_v26, %v393_v25  ;;  %v397_v16 = vsel %vm261_vm1, %v378_v29, 0.0 }
  0xd4   : > { %v323_v36 = vsub.f32 %v1081_v23, %v307_v30  ;;  %v270_v39 = vadd.f32 %v269_v34, %v268_v31  ;;  %v399_v43 = vsel %vm394_vm3, %v377_v18, 0.0  ;;  %v362_v17 = vmul.f32 %v322_v35, %v322_v35 }
  0xd5   : > { %v424_v46 = vmul.f32 %v352_v42, %v352_v42  ;;  %v425_v52 = vmul.f32 %v353_v44, %v353_v44  ;;  %v398_v40 = vadd.f32 %v397_v16, %v396_v32  ;;  %v271_v42 = vsel %vm261_vm1, %v258_v33, 0.0 }
  0xd6   : > { %v337_v49 = vpop.permute.xlu0 %336  ;;  %v339_v54 = vpop.permute.xlu1 %338  ;;  %v363_v44 = vmul.f32 %v323_v36, %v323_v36  ;;  %v381_v45 = vsel %vm372_vm2, %v379_v37, %v380_v38  ;;  %v382_v51 = vrot.slane %v362_v17, 1  ;;  %v403_v55 = vsel %vm394_vm3, %v380_v38, 0.0 }
  0xd7   : > { %442 = vrot.lane.b32.xlu1 %v423_v41, %s859_s8  ;;  %v354_v53 = vsub.f32 %v1078_v22, %v337_v49  ;;  %444 = vrot.lane.b32.xlu0 %v424_v46, %s859_s8  ;;  %v355_v56 = vsub.f32 %v1081_v23, %v339_v54  ;;  %v259_v41 = vmul.f32 %v1078_v22, %v1078_v22  ;;  %v401_v50 = vsel %vm261_vm1, %v381_v45, 0.0 }
  0xd8   : > { %v272_v46 = vadd.f32 %v271_v42, %v270_v39  ;;  %v400_v47 = vadd.f32 %v399_v43, %v398_v40  ;;  %v275_v54 = vsel %vm261_vm1, %v260_v48, 0.0 }
  0xd9   : > { %v426_v59 = vmul.f32 %v354_v53, %v354_v53  ;;  %v427_v63 = vmul.f32 %v355_v56, %v355_v56  ;;  %v273_v49 = vsel %vm261_vm1, %v259_v41, 0.0 }
  0xda   : > { %v274_v22 = vadd.f32 %v273_v49, %v272_v46  ;;  %v402_v53 = vadd.f32 %v401_v50, %v400_v47 }
  0xdb   : > { %446 = vrot.lane.b32.xlu1 %v425_v52, %s859_s8  ;;  %448 = vrot.lane.b32.xlu0 %v426_v59, %s859_s8  ;;  %v383_v52 = vrot.slane %v363_v44, 1 }
  0xdc   : > { %v276_v57 = vadd.f32 %v275_v54, %v274_v22  ;;  %v404_v58 = vadd.f32 %v403_v55, %v402_v53 }
  0xdd   : > { %v384_v56 = vsel %vm372_vm2, %v382_v51, %v383_v52  ;;  %v407_v60 = vsel %vm394_vm3, %v383_v52, 0.0 }
  0xde   : > { %v405_v59 = vsel %vm261_vm1, %v384_v56, 0.0 }
  0xdf   : > { %450 = vrot.lane.b32.xlu1 %v427_v63, %s859_s8  ;;  %v406_v23 = vadd.f32 %v405_v59, %v404_v58  ;;  %s770_s8 = sshll.u32 %s860_s21, 4  ;;  %s771_s8 = int_to_ptr.vmem [resolvable:$false] %s770_s8 }
  0xe0   : > { %p773_p7 = scmp.lt.s32.totalorder %s1162_s16, %s771_s8 }
  0xe1   : > { %v408_v61 = vadd.f32 %v407_v60, %v406_v23 }
  0xfa   : > { %277 = vadd.xlane.f32.xlu0 %v276_v57 }
 0x103   : > { %409 = vadd.xlane.f32.xlu1 %v408_v61 }
 0x141   : > { %v437_v62 = vpop.permute.xlu0 %436 }
 0x142   : > { %v461_v1 = vsel %vm460_vm4, %v437_v62, 0.0 }
 0x145   : > { %v439_v63 = vpop.permute.xlu1 %438  ;;  %v441_v0 = vpop.permute.xlu0 %440 }
 0x146   : > { %v462_v2 = vsel %vm460_vm4, %v439_v63, 0.0  ;;  %v464_v4 = vsel %vm460_vm4, %v441_v0, 0.0 }
 0x147   : > { %v463_v3 = vadd.f32 %v462_v2, %v461_v1 }
 0x149   : > { %v465_v5 = vadd.f32 %v464_v4, %v463_v3  ;;  %v443_v6 = vpop.permute.xlu1 %442  ;;  %v445_v8 = vpop.permute.xlu0 %444 }
 0x14a   : > { %v466_v9 = vsel %vm460_vm4, %v443_v6, 0.0  ;;  %v468_v10 = vsel %vm460_vm4, %v445_v8, 0.0 }
 0x14b   : > { %v467_v12 = vadd.f32 %v466_v9, %v465_v5 }
 0x14d   : > { %v469_v7 = vadd.f32 %v468_v10, %v467_v12  ;;  %v447_v13 = vpop.permute.xlu1 %446  ;;  %v449_v14 = vpop.permute.xlu0 %448 }
 0x14e   : > { %v470_v15 = vsel %vm460_vm4, %v447_v13, 0.0  ;;  %v472_v18 = vsel %vm460_vm4, %v449_v14, 0.0 }
 0x14f   : > { %v471_v19 = vadd.f32 %v470_v15, %v469_v7 }
 0x151   : > { %v473_v20 = vadd.f32 %v472_v18, %v471_v19  ;;  %v451_v21 = vpop.permute.xlu1 %450 }
 0x152   : > { %v474_v24 = vsel %vm460_vm4, %v451_v21, 0.0 }
 0x153   : > { %v475_v11 = vadd.f32 %v474_v24, %v473_v20 }
 0x155   : > { %476 = vadd.xlane.f32.xlu0 %v475_v11 }
 0x187   : > { %v278_v25 = vpop.xlane.xlu0 %277 }
 0x188   : > { %v279_v26 = vrot.slane %v278_v25, 4 }
 0x18a   : > { %v280_v27 = vadd.f32 %v279_v26, %v278_v25 }
 0x18c   : > { %v281_v28 = vrot.slane %v280_v27, 2 }
 0x18e   : > { %v282_v29 = vadd.f32 %v281_v28, %v280_v27 }
 0x190   : > { %v410_v30 = vpop.xlane.xlu1 %409  ;;  %v283_v31 = vrot.slane %v282_v29, 1 }
 0x191   : > { %v411_v32 = vrot.slane %v410_v30, 4 }
 0x192   : > { %v284_v33 = vadd.f32 %v283_v31, %v282_v29 }
 0x193   : > { %v412_v34 = vadd.f32 %v411_v32, %v410_v30 }
 0x194   : > { %629 = vpush %v284_v33 }
 0x195   : > { %v413_v16 = vrot.slane %v412_v34, 2 }
 0x197   : > { %v414_v35 = vadd.f32 %v413_v16, %v412_v34 }
 0x199   : > { %v415_v36 = vrot.slane %v414_v35, 1 }
 0x19b   : > { %v416_v37 = vadd.f32 %v415_v36, %v414_v35 }
 0x19d   : > { %631 = vpush %v416_v37 }
 0x1c5   : > { %s630_s18 = spop %629 }
 0x1c6   : > { %s286_s28 = smul.f32 0.00048828125, %s630_s18  ;;  %s772_s18 = scalar_lea.vmem %s771_s8, 32 }
 0x1c7   : > { %p774_p10 = scmp.lt.s32.totalorder %s772_s18, %s766_s12 }
 0x1c9   : > { %p775_p9 = por %p774_p10, %p773_p7 }
 0x1cb   : > { %p776_p11 = pnand %p775_p9, %p769_p13 }
 0x1ce   : > { %s632_s19 = spop %631 }
 0x1cf   : > { %s418_s30 = smul.f32 0.00052083336, %s632_s19 }
 0x1d1   : > { %s419_s20 = sadd.f32 %s418_s30, %s286_s28 }
 0x1e2   : > { %v477_v38 = vpop.xlane.xlu0 %476 }
 0x1e3   : > { %v478_v39 = vrot.slane %v477_v38, 4 }
 0x1e5   : > { %v479_v40 = vadd.f32 %v478_v39, %v477_v38 }
 0x1e7   : > { %v480_v41 = vrot.slane %v479_v40, 2 }
 0x1e9   : > { %v481_v42 = vadd.f32 %v480_v41, %v479_v40 }
 0x1eb   : > { %v482_v43 = vrot.slane %v481_v42, 1 }
 0x1ed   : > { %v483_v17 = vadd.f32 %v482_v43, %v481_v42 }
 0x1ef   : > { %633 = vpush %v483_v17 }
 0x220   : > { %s634_s15 = spop %633 }
 0x221   : > { %s485_s27 = smul.f32 0.00052083336, %s634_s15 }
 0x223   : > { %s486_s6 = sadd.f32 %s485_s27, %s419_s20 }
 0x225   : > { %v487_v44 = vstv %s486_s6 }
 0x226   : > { %488 = vst [vmem:[%s224_s26] sm:$0x1] %v487_v44 }
 0x227   : > { %779 = shalt.err (!%p776_p11)
}
 0x228   : > { %s780_s4 = scalar_lea.hbm %s1160_s25, 16  ;;  %s784_s30 = scalar_lea.hbm %s1211_s2, 32 }
 0x229   : > { %p781_p1 = scmp.ne.s32.totalorder %s1160_s25, %s780_s4  ;;  %p785_p5 = scmp.lt.u32.totalorder %s1160_s25, %s1211_s2 }
 0x22a   : > { %p786_p4 = scmp.lt.u32.totalorder %s784_s30, %s780_s4  ;;  %p788_p0 = scmp.lt.u32.totalorder %s780_s4, %s1160_s25 }
 0x22b   : > { %p782_p6 = pnand %p781_p1, %p1222_p3 }
 0x22c   : > { %p787_p8 = por %p786_p4, %p785_p5 }
 0x22d   : > { %p783_p2 = pneg %p782_p6 }
 0x22e   : > { %p789_p12 = por %p788_p0, %p787_p8 }
 0x230   : > { %p790_p13 = pnand %p789_p12, %p783_p2 }
 0x232   : > { %793 = shalt.err (!%p790_p13)
}
 0x233   : > { %639 = dma.vmem_to_hbm [thread:$0]  (%p1222_p3), %s1162_s16, 16, %s1160_s25, %s490_s7  }
 0x234 PF: > { %s515_s26 = sand.u32 1, %s832_s9   ;;  %p1223_p7 = scmp.ne.s32.totalorder %s1217_s24, 0 }
 0x235   : > { %p1224_p10 = scmp.ge.s32.totalorder %s852_s14, 2  ;;  %s516_s20 = scalar_lea.sflag [#allocation4], %s515_s26 }
 0x237   : > { %p649_p9 = pnand %p1224_p10, %p1223_p7 }
 0x239   : > { %827 = dma.done.wait (!%p649_p9), %s516_s20, 16  }
 0x23a   : > { %829 = vsyncadd (!%p649_p9), %s516_s20, 4294967280  ;;  %s21_s14 = sadd.s32 1, %s852_s14   ;;  %s1225_s9 = smov %s836_s10 }
 0x23b   : > { %p18_p11 = scmp.ge.s32.totalorder %s21_s14, 4   ;;  %s1226_s10 = smov %s840_s11 }
 0x23c   : > { %s1227_s11 = smov %s932_s23  ;;  %s1228_s12 = smov %s848_s13 }
 0x23d   : > { %s1229_s13 = smov %s1231_s17  ;;  %20 = sbr.rel (!%p18_p11) target bundleno = 8 (0x8), region = 86 }
 0x244   :  { %520 = vsyncpa [#allocation3], 1 }
 0x245   :  { %522 = vsyncpa [#allocation3 + $0x1], 1 }
 0x246   :  { %523 = vsyncpa [#allocation6], 1 }
 0x247   :  { %525 = vsyncpa [#allocation6 + $0x1], 1 }
 0x248   :  { %526 = vsyncpa [#allocation4], 1 }
 0x249   :  { %528 = vsyncpa [#allocation4 + $0x1], 1 }

</bundles_post_ra>
